<compile_context>
chip_gen: v7x
topology: tpu7x:2x2x1
jax: 0.10.0
libtpu: 0.0.40
codegen_flags: <defaults>
</compile_context>

<pallas_src>
import functools

import jax
import jax.numpy as jnp
from jax import lax
from jax.experimental import pallas as pl
from jax.experimental.pallas import tpu as pltpu


def _csa_block_kernel(eps, inv_hw, inv_hwm1, x_ref, nm_ref, ns_ref, o_ref):
    """One grid step == (bt samples) x (ct channels), lane-dense over HW.

    x_ref  : VMEM (bt, ct, HW)  activations (HW on lanes)
    nm_ref : VMEM (bt, ct, 1)   per-sample style mean (precomputed)
    ns_ref : VMEM (bt, ct, 1)   per-sample style std  (precomputed)
    o_ref  : VMEM (bt, ct, HW)
    """
    xf = x_ref[...].astype(jnp.float32)                    # (bt, ct, HW)

    # Single sweep: sum and sum-of-squares -> mean / unbiased var (ddof=1).
    s = jnp.sum(xf, axis=-1, keepdims=True)                # (bt, ct, 1)
    sq = jnp.sum(xf * xf, axis=-1, keepdims=True)          # (bt, ct, 1)
    mean = s * inv_hw
    # Clamp: the one-pass formula can go slightly negative under cancellation.
    var = jnp.maximum((sq - mean * s) * inv_hwm1, 0.0)

    new_mean = nm_ref[...].astype(jnp.float32)             # (bt, ct, 1)
    new_std = ns_ref[...].astype(jnp.float32)              # (bt, ct, 1)

    # Fold normalization + style + residual into one per-channel affine FMA:
    #   out = x + (x-mean)*a + new_mean = x*(1+a) + (new_mean - mean*a)
    a = new_std * lax.rsqrt(var + eps)                     # EUP rsqrt (no divide)
    bias = new_mean - mean * a
    o_ref[...] = (xf * (1.0 + a) + bias).astype(o_ref.dtype)


def _vmem_capacity_bytes():
    try:
        return int(pltpu.get_tpu_info().vmem_capacity_bytes)
    except Exception:
        return 64 * 1024 * 1024  # conservative (v7x per-TC)


def csa_block_forward(x, label, weights, pm_pos, ps_pos, pm_neg, ps_neg, eps=1e-5):
    """x: (B, C, H, W), label: (B,) i32, weights: (B, K) f32, protos: (K, C) f32."""
    B, C, H, W = x.shape
    HW = H * W
    assert HW > 1, "unbiased variance (ddof=1) requires H*W > 1"

    # Style-mixing matmul hoisted out of the per-step path: (B,K)@(K,C) is tiny
    # glue next to the mem-bound normalization. Compute both prototype variants
    # and select per-sample by label (matches the PyTorch label branch).
    sel = (label == 0)[:, None]
    new_mean = jnp.where(sel, weights @ pm_pos, weights @ pm_neg).astype(jnp.float32)
    new_std = jnp.where(sel, weights @ ps_pos, weights @ ps_neg).astype(jnp.float32)
    new_mean = new_mean.reshape(B, C, 1)
    new_std = new_std.reshape(B, C, 1)

    # NCHW-native: merge trailing H,W into one lane-dense axis (metadata-only reshape).
    x3 = x.reshape(B, C, HW)

    # ---- Generation-aware block sizing (budgeted in f32 working bytes) ----
    vmem_cap = _vmem_capacity_bytes()
    # 6 MiB/buffer on 128 MiB-VMEM parts (v5e/v6e), 4 MiB on 64 MiB parts (v7x).
    target_block = (6 << 20) if vmem_cap > (64 << 20) else (4 << 20)

    per_row_f32 = HW * 4            # one channel row, f32 working width
    per_sample_f32 = C * per_row_f32

    if per_sample_f32 <= target_block:
        ct = C
        bt = max(1, target_block // per_sample_f32)
        bt = min(bt, B)
        if B >= 2:
            # Guarantee >= 2 grid steps so ('parallel',...) shards across both
            # v7x TensorCores; costs at most one extra ~0.35us step elsewhere.
            bt = min(bt, pl.cdiv(B, 2))
    else:
        # One sample doesn't fit the budget: tile channels instead (reduction is
        # over HW only, so C-tiling is correct). Keep ct a sublane multiple.
        bt = 1
        ct = max(8, ((target_block // per_row_f32) // 8) * 8)
        ct = min(ct, C)
        # TODO(synk): if C < 8 and a single channel row still exceeds the budget,
        # an HW-chunked two-pass reduction would be needed; not implemented here.

    grid = (pl.cdiv(B, bt), pl.cdiv(C, ct))   # ragged tails are fine: rows are independent

    # Scoped-VMEM budget: double-buffered in/out HBM blocks + f32 working set + slack.
    blk_elems = bt * ct * HW
    blk_in = blk_elems * x.dtype.itemsize
    blk_f32 = blk_elems * 4
    small = bt * ct * 4
    est = 4 * blk_in + 2 * blk_f32 + 4 * small + (2 << 20)
    vmem_limit = max(est, 16 << 20)
    vmem_limit = min(vmem_limit, max(vmem_cap - (8 << 20), 16 << 20))

    kernel = functools.partial(
        _csa_block_kernel, float(eps), 1.0 / HW, 1.0 / (HW - 1))

    bytes_accessed = 2 * x.size * x.dtype.itemsize + 2 * B * C * 4
    out = pl.pallas_call(
        kernel,
        out_shape=jax.ShapeDtypeStruct((B, C, HW), x.dtype),
        grid=grid,
        in_specs=[
            pl.BlockSpec((bt, ct, HW), lambda b, c: (b, c, 0)),  # x block (lane-dense HW)
            pl.BlockSpec((bt, ct, 1), lambda b, c: (b, c, 0)),   # new_mean block
            pl.BlockSpec((bt, ct, 1), lambda b, c: (b, c, 0)),   # new_std block
        ],
        out_specs=pl.BlockSpec((bt, ct, HW), lambda b, c: (b, c, 0)),
        compiler_params=pltpu.CompilerParams(
            dimension_semantics=("parallel", "parallel"),
            vmem_limit_bytes=int(vmem_limit)),
        cost_estimate=pl.CostEstimate(
            flops=6 * B * C * HW,
            transcendentals=B * C,
            bytes_accessed=bytes_accessed),
    )(x3, new_mean, new_std)

    return out.reshape(B, C, H, W)


def csa_block_reference(x, label, weights, pm_pos, ps_pos, pm_neg, ps_neg, eps=1e-5):
    """Pure-JAX reference mirroring the PyTorch forward."""
    x_mean = jnp.mean(x, axis=(2, 3), keepdims=True)
    x_var = jnp.var(x, axis=(2, 3), keepdims=True, ddof=1)   # torch.var default: unbiased
    x_norm = (x - x_mean) / jnp.sqrt(x_var + eps)
    sel = (label == 0)[:, None, None]
    pm = jnp.where(sel, pm_pos[None], pm_neg[None])          # (B, K, C)
    ps = jnp.where(sel, ps_pos[None], ps_neg[None])
    new_mean = jnp.einsum('bk,bkc->bc', weights, pm)
    new_std = jnp.einsum('bk,bkc->bc', weights, ps)
    x_new = x_norm * new_std[:, :, None, None] + new_mean[:, :, None, None]
    return x + x_new


if __name__ == "__main__":
    # Small, module-consistent shapes: style_dim == dim == C; H*W = 256 (lane-dense).
    B, C, H, W = 2, 32, 16, 16
    style_dim = C
    base_style_num = 8
    concentration_coeff = 1.0
    eps = 1e-5

    key = jax.random.PRNGKey(0)
    kx, kd, kp1, kp2, kp3, kp4 = jax.random.split(key, 6)

    x = jax.random.normal(kx, (B, C, H, W), dtype=jnp.float32)
    label = jnp.array([0, 1], dtype=jnp.int32)

    # TODO(synk): Dirichlet sampling (the module's self._dirichlet.sample) is host-side
    # RNG glue; done here with jax.random rather than inside the kernel.
    concentration = jnp.full((base_style_num,), concentration_coeff, dtype=jnp.float32)
    combine_weights = jax.random.dirichlet(kd, concentration, shape=(B,)).astype(jnp.float32)

    # Prototype buffers are zero-initialized in __init__; use deterministic random values
    # here so the style-mixing path is actually exercised (synthetic, no checkpoint).
    proto_mean_pos = 0.1 * jax.random.normal(kp1, (base_style_num, style_dim), dtype=jnp.float32)
    proto_std_pos = 1.0 + 0.1 * jax.random.normal(kp2, (base_style_num, style_dim), dtype=jnp.float32)
    proto_mean_neg = 0.1 * jax.random.normal(kp3, (base_style_num, style_dim), dtype=jnp.float32)
    proto_std_neg = 1.0 + 0.1 * jax.random.normal(kp4, (base_style_num, style_dim), dtype=jnp.float32)

    out = csa_block_forward(x, label, combine_weights,
                            proto_mean_pos, proto_std_pos,
                            proto_mean_neg, proto_std_neg, eps)
    out = jax.block_until_ready(out)

    ref = csa_block_reference(x, label, combine_weights,
                              proto_mean_pos, proto_std_pos,
                              proto_mean_neg, proto_std_neg, eps)

    assert out.shape == (B, C, H, W)
    assert jnp.allclose(out, ref, rtol=1e-5, atol=1e-5), "mismatch vs reference"
    print("KERNEL_OK")
</pallas_src>

<mosaic_0001>
module attributes {stable_mosaic.version = 11 : i64} {
  func.func @_csa_block_kernel(%arg0: i32, %arg1: i32, %arg2: memref<1x32x256xf32, #tpu.memory_space<vmem>>, %arg3: memref<1x32x1xf32, #tpu.memory_space<vmem>>, %arg4: memref<1x32x1xf32, #tpu.memory_space<vmem>>, %arg5: memref<1x32x256xf32, #tpu.memory_space<vmem>>) attributes {dimension_semantics = [#tpu.dimension_semantics<parallel>, #tpu.dimension_semantics<parallel>], iteration_bounds = array<i64: 2, 1>, scalar_prefetch = 0 : i64, scratch_operands = 0 : i64, tpu.core_type = #tpu.core_type<tc>, window_params = [{transform_indices = @transform_0, window_bounds = array<i64: 1, 32, 256>}, {transform_indices = @transform_1, window_bounds = array<i64: 1, 32, 1>}, {transform_indices = @transform_2, window_bounds = array<i64: 1, 32, 1>}, {transform_indices = @transform_3, window_bounds = array<i64: 1, 32, 256>}]} {
    %c0 = arith.constant 0 : index
    %c0_0 = arith.constant 0 : index
    %c0_1 = arith.constant 0 : index
    %0 = vector.load %arg2[%c0, %c0_0, %c0_1] : memref<1x32x256xf32, #tpu.memory_space<vmem>>, vector<1x32x256xf32>
    %cst = arith.constant dense<0.000000e+00> : vector<1x32xf32>
    %1 = vector.multi_reduction <add>, %0, %cst [2] : vector<1x32x256xf32> to vector<1x32xf32>
    %2 = vector.shape_cast %1 : vector<1x32xf32> to vector<1x32x1xf32>
    %3 = arith.mulf %0, %0 : vector<1x32x256xf32>
    %cst_2 = arith.constant dense<0.000000e+00> : vector<1x32xf32>
    %4 = vector.multi_reduction <add>, %3, %cst_2 [2] : vector<1x32x256xf32> to vector<1x32xf32>
    %5 = vector.shape_cast %4 : vector<1x32xf32> to vector<1x32x1xf32>
    %cst_3 = arith.constant 3.906250e-03 : f32
    %6 = vector.broadcast %cst_3 : f32 to vector<1x32x1xf32>
    %7 = arith.mulf %2, %6 : vector<1x32x1xf32>
    %8 = arith.mulf %7, %2 : vector<1x32x1xf32>
    %9 = arith.subf %5, %8 : vector<1x32x1xf32>
    %cst_4 = arith.constant 0.00392156886 : f32
    %10 = vector.broadcast %cst_4 : f32 to vector<1x32x1xf32>
    %11 = arith.mulf %9, %10 : vector<1x32x1xf32>
    %cst_5 = arith.constant 0.000000e+00 : f32
    %12 = vector.broadcast %cst_5 : f32 to vector<1x32x1xf32>
    %13 = arith.maximumf %11, %12 : vector<1x32x1xf32>
    %c0_6 = arith.constant 0 : index
    %c0_7 = arith.constant 0 : index
    %c0_8 = arith.constant 0 : index
    %14 = vector.load %arg3[%c0_6, %c0_7, %c0_8] : memref<1x32x1xf32, #tpu.memory_space<vmem>>, vector<1x32x1xf32>
    %c0_9 = arith.constant 0 : index
    %c0_10 = arith.constant 0 : index
    %c0_11 = arith.constant 0 : index
    %15 = vector.load %arg4[%c0_9, %c0_10, %c0_11] : memref<1x32x1xf32, #tpu.memory_space<vmem>>, vector<1x32x1xf32>
    %cst_12 = arith.constant 9.99999974E-6 : f32
    %16 = vector.broadcast %cst_12 : f32 to vector<1x32x1xf32>
    %17 = arith.addf %13, %16 : vector<1x32x1xf32>
    %18 = math.rsqrt %17 : vector<1x32x1xf32>
    %19 = arith.mulf %15, %18 : vector<1x32x1xf32>
    %20 = arith.mulf %7, %19 : vector<1x32x1xf32>
    %21 = arith.subf %14, %20 : vector<1x32x1xf32>
    %cst_13 = arith.constant 1.000000e+00 : f32
    %22 = vector.broadcast %cst_13 : f32 to vector<1x32x1xf32>
    %23 = arith.addf %22, %19 : vector<1x32x1xf32>
    %24 = vector.broadcast %23 : vector<1x32x1xf32> to vector<1x32x256xf32>
    %25 = arith.mulf %0, %24 : vector<1x32x256xf32>
    %26 = vector.broadcast %21 : vector<1x32x1xf32> to vector<1x32x256xf32>
    %27 = arith.addf %25, %26 : vector<1x32x256xf32>
    %c0_14 = arith.constant 0 : index
    %c0_15 = arith.constant 0 : index
    %c0_16 = arith.constant 0 : index
    %28 = vector.load %arg5[%c0_14, %c0_15, %c0_16] : memref<1x32x256xf32, #tpu.memory_space<vmem>>, vector<1x32x256xf32>
    tpu.vector_store %arg5[%c0_14, %c0_15, %c0_16], %27 {strides = array<i32>} : memref<1x32x256xf32, #tpu.memory_space<vmem>>, vector<1x32x256xf32>,
    return
  }
  func.func @transform_0(%arg0: i32, %arg1: i32) -> (i32, i32, i32) {
    %c0_i32 = arith.constant 0 : i32
    %c0_i32_0 = arith.constant 0 : i32
    return %arg0, %arg1, %c0_i32 : i32, i32, i32
  }
  func.func @transform_1(%arg0: i32, %arg1: i32) -> (i32, i32, i32) {
    %c0_i32 = arith.constant 0 : i32
    %c0_i32_0 = arith.constant 0 : i32
    return %arg0, %arg1, %c0_i32 : i32, i32, i32
  }
  func.func @transform_2(%arg0: i32, %arg1: i32) -> (i32, i32, i32) {
    %c0_i32 = arith.constant 0 : i32
    %c0_i32_0 = arith.constant 0 : i32
    return %arg0, %arg1, %c0_i32 : i32, i32, i32
  }
  func.func @transform_3(%arg0: i32, %arg1: i32) -> (i32, i32, i32) {
    %c0_i32 = arith.constant 0 : i32
    %c0_i32_0 = arith.constant 0 : i32
    return %arg0, %arg1, %c0_i32 : i32, i32, i32
  }
}

</mosaic_0001>

<bundles_post_ra>
// kernel: tpu_custom_call.1
= control target key start
LH: loop header
LB: loop body
LE: loop exit
PB: predicated region body
PF: predicated region fallthrough
CT: control target
= control target key end

     0   :  { %8 = vsyncpa [#allocation3], 0  ;;  %s940_s0 = inlined_call_operand.vmem [shape: f32[2,32,256], index: 0, kind: input, shape index: {}]   ;;  %s941_s1 = inlined_call_operand.vmem [shape: f32[2,32,1], index: 1, kind: input, shape index: {}]   ;;  %s942_s2 = inlined_call_operand.vmem [shape: f32[2,32,1], index: 2, kind: input, shape index: {}]   ;;  %s943_s3 = inlined_call_operand.hbm [shape: f32[2,32,256], index: 3, kind: output, shape index: {}]  }
   0x1   :  { %10 = vsyncpa [#allocation3 + $0x1], 0  ;;  %s759_s12 = smov 0   ;;  %s761_s13 = smov 0  }
   0x2   :  { %s763_s14 = smov 0   ;;  %s765_s15 = smov 0  }
   0x3   :  { %s767_s16 = smov 0   ;;  %s769_s17 = smov 0  }
   0x4 LB: > { %s566_s18 = sadd.s32 4294967295, %s733_s17   ;;  %s567_s19 = sadd.s32 4294967294, %s733_s17   ;;  %s733_s17 = sphi %s769_s17, %s16_s17   ;;  %s729_s16 = sphi %s767_s16, %s950_s16   ;;  %s725_s15 = sphi %s765_s15, %s949_s15   ;;  %s721_s14 = sphi %s763_s14, %s948_s14   ;;  %s717_s13 = sphi %s761_s13, %s947_s13   ;;  %s713_s12 = sphi %s759_s12, %s946_s12  }
   0x5   : > { %s28_s20 = sadd.s32 1, %s729_s16  ;;  %s121_s21 = sadd.s32 1, %s721_s14 }
   0x6   : > { %p30_p0 = scmp.ge.s32.totalorder %s28_s20, 2  ;;  %p131_p1 = scmp.ne.s32.totalorder %s721_s14, %s717_s13 }
   0x7   : > { %p132_p2 = scmp.eq.s32.totalorder %s566_s18, 1  ;;  %p137_p3 = scmp.ne.s32.totalorder %s717_s13, %s713_s12 }
   0x8   : > { %s952_s20 = smov (%p30_p0, %s28_s20), 0  ;;  %p138_p5 = scmp.eq.s32.totalorder %s567_s19, 1 }
   0x9   : > { %p799_p4 = por %p132_p2, %p131_p1  ;;  %s116_s23 = ssub.s32 %s729_s16, %s952_s20 }
   0xa   : > { %p570_p6 = scmp.ge.s32.totalorder %s733_s17, 1  ;;  %p119_p7 = scmp.eq.s32.totalorder %s116_s23, 0 }
   0xb   : > { %p806_p8 = por %p138_p5, %p137_p3  ;;  %p196_p9 = scmp.lt.s32.totalorder %s733_s17, 3 }
   0xc   : > { %s812_s25 = scalar_select %p119_p7, %s721_s14, %s121_s21  }
   0xd   : > { %p197_p10 = pnand %p570_p6, %p196_p9 }
   0xe   : > { %p244_p11 = scmp.lt.s32.totalorder (!%p197_p10), %s725_s15, 1  ;;  %v735_v24 = vmov (!%p197_p10), 0   ;;  %s240_s11 = sand.u32 (!%p197_p10), 1, %s717_s13  }
   0xf   : > { %200 = sbr.rel (%p197_p10) target bundleno = 372 (0x174), region = 32  ;;  %646 = vset.pattern.permute.xlu1 (!%p197_p10), %v735_v24  ;;  %645 = vset.pattern.permute.xlu0 (!%p197_p10), %v735_v24  ;;  %s571_s18 = sshll.u32 (!%p197_p10), %s240_s11, 6 }
  0x10   : > { %s242_s19 = scalar_lea.vmem (!%p197_p10), [#allocation2], %s571_s18  ;;  %s586_s21 = sshll.u32 (!%p197_p10), %s725_s15, 10 }
  0x11   : > { %s448_s23 = sshll.u32 (!%p197_p10), %s242_s19, 4  ;;  %s888_s28 = scalar_lea.hbm (!%p197_p10), %s943_s3, %s586_s21  ;;  %s890_s23 = int_to_ptr.vmem [resolvable:$true] %s448_s23 }
  0x12   : > { %s655_s29 = scalar_lea.vmem (!%p197_p10), %s890_s23, 1024 }
  0x13   : > { %p656_p12 = scmp.ne.s32.totalorder (!%p197_p10), %s890_s23, %s655_s29 }
  0x15   : > { %p657_p13 = pnand (!%p197_p10), %p656_p12, %p799_p4 }
  0x16   : > { %s816_s26 = scalar_select %p244_p11, %s725_s15, 1 }
  0x17   : > { %s894_s15 = scalar_lea.sflag [#allocation3], %s240_s11  ;;  %p658_p0 = pneg %p657_p13 }
  0x18   : > { %s583_s27 = sshll.u32 %s816_s26, 6  ;;  %s584_s4 = sshll.u32 %s816_s26, 5 }
  0x19   : > { %s252_s30 = scalar_lea.vmem %s940_s0, %s583_s27  ;;  %s272_s7 = scalar_lea.vmem %s942_s2, %s584_s4 }
  0x1a   : > { %v822_v0 = vld [vmem:[%s252_s30 + $0x20] sm:$0xff]  ;;  %v824_v1 = vld [vmem:[%s252_s30 + $0x28] sm:$0xff]  ;;  %v832_v5 = vld [vmem:[%s252_s30 + $0x30] sm:$0xff]  ;;  %s262_s10 = scalar_lea.vmem %s941_s1, %s584_s4 }
  0x1b   : > { %v826_v2 = vld [vmem:[%s252_s30] sm:$0xff]  ;;  %v289_v3 = vadd.f32 %v824_v1, %v822_v0  ;;  %v830_v4 = vld [vmem:[%s252_s30 + $0x8] sm:$0xff]  ;;  %v834_v6 = vld [vmem:[%s252_s30 + $0x38] sm:$0xff]  ;;  %v301_v17 = vmul.f32 %v832_v5, %v832_v5  ;;  %v299_v20 = vmul.f32 %v822_v0, %v822_v0  ;;  %v300_v21 = vmul.f32 %v824_v1, %v824_v1 }
  0x1c   : > { %v283_v7 = vadd.f32 %v830_v4, %v826_v2  ;;  %v838_v8 = vld [vmem:[%s252_s30 + $0x10] sm:$0xff]  ;;  %v840_v9 = vld [vmem:[%s252_s30 + $0x18] sm:$0xff]  ;;  %v292_v10 = vadd.f32 %v834_v6, %v832_v5  ;;  %v295_v14 = vmul.f32 %v826_v2, %v826_v2  ;;  %v296_v15 = vmul.f32 %v830_v4, %v830_v4  ;;  %v340_v57 = vld [vmem:[%s272_s7 + $0x8] sm:$0xff]  ;;  %s736_s30 = smov [#allocation2]  }
  0x1d   : > { %290 = vadd.xlane.f32.xlu1 %v289_v3  ;;  %v297_v11 = vmul.f32 %v838_v8, %v838_v8  ;;  %v298_v12 = vmul.f32 %v840_v9, %v840_v9  ;;  %v286_v13 = vadd.f32 %v840_v9, %v838_v8  ;;  %v302_v18 = vmul.f32 %v834_v6, %v834_v6  ;;  %v339_v58 = vld [vmem:[%s272_s7] sm:$0xff]  ;;  %v341_v63 = vld [vmem:[%s272_s7 + $0x10] sm:$0xff]  ;;  %s659_s4 = sshll.u32 %s736_s30, 4  ;;  %s660_s4 = int_to_ptr.vmem [resolvable:$false] %s659_s4 }
  0x1e   : > { %284 = vadd.xlane.f32.xlu0 %v283_v7  ;;  %v303_v19 = vadd.f32 %v296_v15, %v295_v14  ;;  %v309_v23 = vadd.f32 %v300_v21, %v299_v20  ;;  %v336_v21 = vld [vmem:[%s262_s10 + $0x8] sm:$0xff]  ;;  %v337_v24 = vld [vmem:[%s262_s10 + $0x10] sm:$0xff]  ;;  %s661_s5 = scalar_lea.vmem %s660_s4, 2048  ;;  %p662_p1 = scmp.lt.s32.totalorder %s890_s23, %s660_s4 }
  0x1f   : > { %v306_v16 = vadd.f32 %v298_v12, %v297_v11  ;;  %v312_v22 = vadd.f32 %v302_v18, %v301_v17  ;;  %v342_v12 = vld [vmem:[%s272_s7 + $0x18] sm:$0xff]  ;;  %v335_v18 = vld [vmem:[%s262_s10] sm:$0xff]  ;;  %p663_p2 = scmp.lt.s32.totalorder %s661_s5, %s655_s29 }
  0x21   : > { %293 = vadd.xlane.f32.xlu1 %v292_v10  ;;  %p664_p3 = por %p663_p2, %p662_p1 }
  0x22   : > { %287 = vadd.xlane.f32.xlu0 %v286_v13 }
  0x23   : > { %p665_p5 = pnand %p664_p3, %p658_p0 }
  0x25   : > { %307 = vadd.xlane.f32.xlu1 %v306_v16 }
  0x26   : > { %304 = vadd.xlane.f32.xlu0 %v303_v19 }
  0x29   : > { %313 = vadd.xlane.f32.xlu1 %v312_v22 }
  0x2a   : > { %310 = vadd.xlane.f32.xlu0 %v309_v23 }
  0xaa   : > { %v291_v25 = vpop.xlane.xlu1 %290 }
  0xab   : > { %v285_v26 = vpop.xlane.xlu0 %284  ;;  %v317_v32 = vmul.f32 0.00390625, %v291_v25 }
  0xac   : > { %v315_v27 = vmul.f32 0.00390625, %v285_v26 }
  0xad   : > { %v321_v40 = vmul.f32 %v317_v32, %v291_v25 }
  0xae   : > { %v294_v28 = vpop.xlane.xlu1 %293  ;;  %v319_v33 = vmul.f32 %v315_v27, %v285_v26 }
  0xaf   : > { %v288_v29 = vpop.xlane.xlu0 %287  ;;  %v862_v31 = vmul.f32 0.00390625, %v294_v28 }
  0xb0   : > { %v316_v30 = vmul.f32 0.00390625, %v288_v29 }
  0xb1   : > { %v322_v39 = vmul.f32 %v862_v31, %v294_v28  ;;  %v338_v28 = vld [vmem:[%s262_s10 + $0x18] sm:$0xff] }
  0xb2   : > { %v320_v34 = vmul.f32 %v316_v30, %v288_v29  ;;  %v308_v35 = vpop.xlane.xlu1 %307 }
  0xb3   : > { %v305_v36 = vpop.xlane.xlu0 %304 }
  0xb4   : > { %v324_v37 = vsub.f32 %v308_v35, %v320_v34  ;;  %v323_v38 = vsub.f32 %v305_v36, %v319_v33 }
  0xb6   : > { %v328_v41 = vmul.f32 0.003921569, %v324_v37  ;;  %v327_v42 = vmul.f32 0.003921569, %v323_v38  ;;  %v314_v43 = vpop.xlane.xlu1 %313 }
  0xb7   : > { %v326_v44 = vsub.f32 %v314_v43, %v322_v39  ;;  %v311_v45 = vpop.xlane.xlu0 %310 }
  0xb8   : > { %v332_v46 = vmax.f32 %v328_v41, 0.0  ;;  %v331_v47 = vmax.f32 %v327_v42, 0.0  ;;  %v325_v48 = vsub.f32 %v311_v45, %v321_v40 }
  0xb9   : > { %v330_v49 = vmul.f32 0.003921569, %v326_v44 }
  0xba   : > { %v344_v50 = vadd.f32 1e-05, %v332_v46  ;;  %v343_v51 = vadd.f32 1e-05, %v331_v47  ;;  %v329_v52 = vmul.f32 0.003921569, %v325_v48 }
  0xbb   : > { %v334_v53 = vmax.f32 %v330_v49, 0.0 }
  0xbc   : > { %647 = vrsqrt.f32 %v344_v50  ;;  %v333_v54 = vmax.f32 %v329_v52, 0.0 }
  0xbd   : > { %649 = vrsqrt.f32 %v343_v51  ;;  %v346_v55 = vadd.f32 1e-05, %v334_v53 }
  0xbe   : > { %v345_v56 = vadd.f32 1e-05, %v333_v54 }
  0xbf   : > { %651 = vrsqrt.f32 %v346_v55 }
  0xc0   : > { %653 = vrsqrt.f32 %v345_v56 }
  0xc6   : > { %v648_v59 = vpop.eup %647 }
  0xc7   : > { %v650_v60 = vpop.eup %649  ;;  %v352_v61 = vmul.f32 %v648_v59, %v340_v57 }
  0xc8   : > { %v351_v62 = vmul.f32 %v650_v60, %v339_v58 }
  0xc9   : > { %v652_v3 = vpop.eup %651  ;;  %v364_v7 = vadd.f32 1.0, %v352_v61  ;;  %v356_v20 = vmul.f32 %v352_v61, %v316_v30 }
  0xca   : > { %v654_v10 = vpop.eup %653  ;;  %v363_v11 = vadd.f32 1.0, %v351_v62  ;;  %v354_v15 = vmul.f32 %v652_v3, %v342_v12  ;;  %v355_v17 = vmul.f32 %v351_v62, %v315_v27 }
  0xcb   : > { %374 = vperm.xlu1 %646, %v364_v7   ;;  %v353_v13 = vmul.f32 %v654_v10, %v341_v63  ;;  %v360_v22 = vsub.f32 %v336_v21, %v356_v20 }
  0xcc   : > { %369 = vperm.xlu0 %645, %v363_v11   ;;  %v366_v16 = vadd.f32 1.0, %v354_v15  ;;  %v359_v19 = vsub.f32 %v335_v18, %v355_v17  ;;  %v358_v26 = vmul.f32 %v354_v15, %v862_v31 }
  0xcd   : > { %v365_v14 = vadd.f32 1.0, %v353_v13  ;;  %v357_v23 = vmul.f32 %v353_v13, %v317_v32 }
  0xce   : > { %v362_v29 = vsub.f32 %v338_v28, %v358_v26 }
  0xcf   : > { %379 = vperm.xlu1 %646, %v365_v14   ;;  %v361_v25 = vsub.f32 %v337_v24, %v357_v23 }
  0xd3   : > { %384 = vperm.xlu1 %646, %v366_v16  }
  0xd7   : > { %397 = vperm.xlu1 %646, %v359_v19  }
  0xdb   : > { %402 = vperm.xlu1 %646, %v360_v22  }
  0xdf   : > { %407 = vperm.xlu1 %646, %v361_v25  }
  0xe3   : > { %412 = vperm.xlu1 %646, %v362_v29  }
 0x14a   : > { %v375_v27 = vpop.permute.xlu1 %374 }
 0x14b   : > { %v370_v34 = vpop.permute.xlu0 %369  ;;  %v389_v31 = vmul.f32 %v375_v27, %v838_v8  ;;  %v390_v39 = vmul.f32 %v375_v27, %v840_v9 }
 0x14c   : > { %v387_v30 = vmul.f32 %v370_v34, %v826_v2  ;;  %v388_v32 = vmul.f32 %v370_v34, %v830_v4 }
 0x14e   : > { %v380_v33 = vpop.permute.xlu1 %379 }
 0x14f   : > { %v391_v43 = vmul.f32 %v380_v33, %v822_v0  ;;  %v392_v2 = vmul.f32 %v380_v33, %v824_v1 }
 0x152   : > { %v385_v35 = vpop.permute.xlu1 %384 }
 0x153   : > { %v393_v8 = vmul.f32 %v385_v35, %v832_v5  ;;  %v394_v9 = vmul.f32 %v385_v35, %v834_v6 }
 0x156   : > { %v398_v36 = vpop.permute.xlu1 %397 }
 0x157   : > { %v415_v37 = vadd.f32 %v398_v36, %v387_v30  ;;  %v416_v38 = vadd.f32 %v398_v36, %v388_v32 }
 0x159   : > { %423 = vst [vmem:[%s242_s19] sm:$0xff] %v415_v37  ;;  %424 = vst [vmem:[%s242_s19 + $0x8] sm:$0xff] %v416_v38 }
 0x15a   : > { %v403_v40 = vpop.permute.xlu1 %402 }
 0x15b   : > { %v417_v41 = vadd.f32 %v403_v40, %v389_v31  ;;  %v418_v42 = vadd.f32 %v403_v40, %v390_v39 }
 0x15d   : > { %425 = vst [vmem:[%s242_s19 + $0x10] sm:$0xff] %v417_v41  ;;  %426 = vst [vmem:[%s242_s19 + $0x18] sm:$0xff] %v418_v42 }
 0x15e   : > { %v408_v4 = vpop.permute.xlu1 %407 }
 0x15f   : > { %v419_v44 = vadd.f32 %v408_v4, %v391_v43  ;;  %v420_v45 = vadd.f32 %v408_v4, %v392_v2 }
 0x161   : > { %427 = vst [vmem:[%s242_s19 + $0x20] sm:$0xff] %v419_v44  ;;  %428 = vst [vmem:[%s242_s19 + $0x28] sm:$0xff] %v420_v45 }
 0x162   : > { %v413_v46 = vpop.permute.xlu1 %412 }
 0x163   : > { %v421_v0 = vadd.f32 %v413_v46, %v393_v8  ;;  %v422_v1 = vadd.f32 %v413_v46, %v394_v9 }
 0x165   : > { %429 = vst [vmem:[%s242_s19 + $0x30] sm:$0xff] %v421_v0  ;;  %430 = vst [vmem:[%s242_s19 + $0x38] sm:$0xff] %v422_v1 }
 0x166   : > { %668 = shalt.err (!%p665_p5)
}
 0x167   : > { %s669_s6 = scalar_lea.hbm %s888_s28, 1024  ;;  %s673_s9 = scalar_lea.hbm %s943_s3, 2048 }
 0x168   : > { %p670_p6 = scmp.ne.s32.totalorder %s888_s28, %s669_s6  ;;  %p674_p10 = scmp.lt.u32.totalorder %s888_s28, %s943_s3 }
 0x169   : > { %p675_p11 = scmp.lt.u32.totalorder %s673_s9, %s669_s6  ;;  %p677_p13 = scmp.lt.u32.totalorder %s669_s6, %s888_s28 }
 0x16a   : > { %p671_p7 = pnand %p670_p6, %p799_p4 }
 0x16b   : > { %p676_p12 = por %p675_p11, %p674_p10 }
 0x16c   : > { %p672_p9 = pneg %p671_p7 }
 0x16d   : > { %p678_p0 = por %p677_p13, %p676_p12 }
 0x16f   : > { %p679_p1 = pnand %p678_p0, %p672_p9 }
 0x171   : > { %682 = shalt.err (!%p679_p1)
}
 0x172   : > { %s737_s18 = smov 256   ;;  %s738_s19 = smov 16  }
 0x173   : > { %587 = dma.vmem_to_hbm [thread:$0]  (%p799_p4), %s890_s23, 1024, %s888_s28, %s894_s15, %s737_s18, %s737_s18, %s738_s19  }
 0x174 PF: > { %p593_p2 = scmp.ge.s32.totalorder %s733_s17, 2  ;;  %s463_s21 = sand.u32 1, %s713_s12  }
 0x175   : > { %s464_s26 = scalar_lea.sflag [#allocation3], %s463_s21 }
 0x176   : > { %p590_p3 = pnand %p593_p2, %p806_p8 }
 0x178   : > { %708 = dma.done.wait (!%p590_p3), %s464_s26, 1024  }
 0x179   : > { %710 = vsyncadd (!%p590_p3), %s464_s26, 4294966272  ;;  %s16_s17 = sadd.s32 1, %s733_s17   ;;  %s946_s12 = smov %s717_s13 }
 0x17a   : > { %p13_p5 = scmp.ge.s32.totalorder %s16_s17, 4   ;;  %s947_s13 = smov %s721_s14 }
 0x17b   : > { %s948_s14 = smov %s812_s25  ;;  %s949_s15 = smov %s729_s16 }
 0x17c   : > { %s950_s16 = smov %s952_s20  ;;  %15 = sbr.rel (!%p13_p5) target bundleno = 4 (0x4), region = 73 }
 0x183   :  { %469 = vsyncpa [#allocation3], 1 }
 0x184   :  { %471 = vsyncpa [#allocation3 + $0x1], 1 }

</bundles_post_ra>
